<compile_context>
chip_gen: v6e
topology: v6e:2x2x1
jax: 0.10.0
libtpu: 0.0.40
codegen_flags: <defaults>
</compile_context>

<pallas_src>
import jax
import jax.numpy as jnp
from jax.experimental import pallas as pl
from jax.experimental.pallas import tpu as pltpu

_LANE = 128


def _copy_kernel(src_ref, dst_ref):
    # Whole-tile, full-vreg copy: no scalar addressing, no masked sublane ops.
    dst_ref[...] = src_ref[...]


def _pick_tiling(rows: int, row_bytes: int, max_block_bytes: int):
    """Pick (block_rows, grid) so each resident block stays under the byte cap."""
    max_rows = max(8, max_block_bytes // max(row_bytes, 1))
    if rows <= max_rows:
        return rows, (1,)                      # single step, full-array block
    block_rows = max((max_rows // 8) * 8, 8)   # keep sublane (8) alignment
    return block_rows, (pl.cdiv(rows, block_rows),)


def type_dict_edge_encoder2(emb_weight: jax.Array,
                            *, max_block_bytes: int = 4 << 20) -> jax.Array:
    """Pallas equivalent of TypeDictEdgeEncoder2.forward.

    emb_weight: (num_types, emb_dim) embedding table.
    returns:    (num_types, emb_dim) edge embeddings
                (== table[arange(num_types)] == the table itself).
    """
    num_types, emb_dim = emb_weight.shape
    total = num_types * emb_dim

    # Lane-dense view: the table is row-major contiguous, so this reshape is a
    # free view and every store in the kernel is an unmasked 128-lane store.
    if total % _LANE == 0:
        flat = emb_weight.reshape(total // _LANE, _LANE)
    else:
        # TODO(synk): when num_types*emb_dim is not a multiple of 128 we fall
        # back to the original (masked-store) layout; still correct, just slower.
        flat = emb_weight

    rows, cols = flat.shape
    row_bytes = cols * flat.dtype.itemsize
    block_rows, grid = _pick_tiling(rows, row_bytes, max_block_bytes)

    extra = {}
    if grid[0] > 1:
        # Only annotate "parallel" when there are multiple steps to shard
        # (v7x megacore); with a 1-step grid it is pure overhead.
        extra["compiler_params"] = pltpu.CompilerParams(
            dimension_semantics=("parallel",))

    out_flat = pl.pallas_call(
        _copy_kernel,
        out_shape=jax.ShapeDtypeStruct((rows, cols), flat.dtype),
        grid=grid,
        in_specs=[pl.BlockSpec((block_rows, cols), lambda i: (i, 0))],
        out_specs=pl.BlockSpec((block_rows, cols), lambda i: (i, 0)),
        **extra,
    )(flat)

    return out_flat.reshape(num_types, emb_dim)


if __name__ == "__main__":
    # Module config: cfg.dataset.edge_encoder_num_types and emb_dim.
    num_types, emb_dim = 16, 32

    # Deterministic "nn.Embedding" weights (N(0,1), PyTorch default init).
    key = jax.random.PRNGKey(0)
    emb_weight = jax.random.normal(key, (num_types, emb_dim), dtype=jnp.float32)

    # forward(): encoder(arange(num_types)) == the full weight table.
    edge_embeddings = jax.block_until_ready(type_dict_edge_encoder2(emb_weight))
    ref = emb_weight[jnp.arange(num_types)]
    assert edge_embeddings.shape == (num_types, emb_dim)
    assert edge_embeddings.dtype == jnp.float32
    assert jnp.array_equal(edge_embeddings, ref)

    # Also exercise the multi-step tiled path with a tiny per-block budget.
    emb_weight2 = jax.random.normal(jax.random.PRNGKey(0), (64, 32), jnp.float32)
    out2 = jax.block_until_ready(
        type_dict_edge_encoder2(emb_weight2, max_block_bytes=4096))
    assert jnp.array_equal(out2, emb_weight2)

    print("KERNEL_OK")
</pallas_src>

<mosaic_0001>
module attributes {stable_mosaic.version = 11 : i64} {
  func.func @_copy_kernel(%arg0: i32, %arg1: memref<4x128xf32, #tpu.memory_space<vmem>>, %arg2: memref<4x128xf32, #tpu.memory_space<vmem>>) attributes {dimension_semantics = [#tpu.dimension_semantics<arbitrary>], iteration_bounds = array<i64: 1>, scalar_prefetch = 0 : i64, scratch_operands = 0 : i64, tpu.core_type = #tpu.core_type<tc>, window_params = [{transform_indices = @transform_0, window_bounds = array<i64: 4, 128>}, {transform_indices = @transform_1, window_bounds = array<i64: 4, 128>}]} {
    %c0 = arith.constant 0 : index
    %c0_0 = arith.constant 0 : index
    %0 = vector.load %arg1[%c0, %c0_0] : memref<4x128xf32, #tpu.memory_space<vmem>>, vector<4x128xf32>
    %c0_1 = arith.constant 0 : index
    %c0_2 = arith.constant 0 : index
    %1 = vector.load %arg2[%c0_1, %c0_2] : memref<4x128xf32, #tpu.memory_space<vmem>>, vector<4x128xf32>
    tpu.vector_store %arg2[%c0_1, %c0_2], %0 {strides = array<i32>} : memref<4x128xf32, #tpu.memory_space<vmem>>, vector<4x128xf32>,
    return
  }
  func.func @transform_0(%arg0: i32) -> (i32, i32) {
    %c0_i32 = arith.constant 0 : i32
    %c0_i32_0 = arith.constant 0 : i32
    return %arg0, %c0_i32 : i32, i32
  }
  func.func @transform_1(%arg0: i32) -> (i32, i32) {
    %c0_i32 = arith.constant 0 : i32
    %c0_i32_0 = arith.constant 0 : i32
    return %arg0, %c0_i32 : i32, i32
  }
}

</mosaic_0001>

<bundles_post_ra>
// kernel: tpu_custom_call.1
= control target key start
LH: loop header
LB: loop body
LE: loop exit
PB: predicated region body
PF: predicated region fallthrough
CT: control target
= control target key end

     0   :  { %6 = vsyncpa [#allocation3], 0  ;;  %s102_s0 = inlined_call_operand.hbm [shape: f32[4,128], index: 0, kind: input, shape index: {}]   ;;  %s103_s1 = inlined_call_operand.hbm [shape: f32[4,128], index: 1, kind: output, shape index: {}]  }
   0x1   :  { %7 = vsyncpa [#allocation4], 0  ;;  %s84_s6 = smov [#allocation2]  }
   0x2   :  { %s14_s7 = sshll.u32 %s84_s6, 4  ;;  %s15_s7 = int_to_ptr.vmem [resolvable:$true] %s14_s7 }
   0x3   :  { %s48_s8 = scalar_lea.vmem %s15_s7, 64  ;;  %p53_p1 = scmp.lt.s32.totalorder %s15_s7, %s15_s7 }
   0x4   :  { %p49_p0 = scmp.ne.s32.totalorder %s15_s7, %s48_s8  ;;  %p54_p2 = scmp.lt.s32.totalorder %s48_s8, %s48_s8 }
   0x6   :  { %p55_p3 = por %p54_p2, %p53_p1 }
   0x8   :  { %p56_p4 = pnand %p55_p3, %p49_p0 }
   0xa   :  { %59 = shalt.err (!%p56_p4)
}
   0xb   :  { %17 = dma.hbm_to_vmem [thread:$0]  %s102_s0, 64, %s15_s7, [#allocation3]  }
   0xc   :  { %80 = dma.done.wait [#allocation3], 64  }
   0xd   :  { %81 = vsyncadd [#allocation3], 4294967232  ;;  %s85_s11 = smov [#allocation5]   ;;  %v21_v0 = vld [vmem:[#allocation2] sm:$0xf] }
   0xe   :  { %s29_s12 = sshll.u32 %s85_s11, 4  ;;  %22 = vst [vmem:[#allocation5] sm:$0xf] %v21_v0  ;;  %s30_s12 = int_to_ptr.vmem [resolvable:$true] %s29_s12 }
   0xf   :  { %s60_s13 = scalar_lea.vmem %s30_s12, 64  ;;  %p65_p6 = scmp.lt.s32.totalorder %s30_s12, %s30_s12 }
  0x10   :  { %p61_p5 = scmp.ne.s32.totalorder %s30_s12, %s60_s13  ;;  %p66_p7 = scmp.lt.s32.totalorder %s60_s13, %s60_s13 }
  0x12   :  { %p67_p8 = por %p66_p7, %p65_p6 }
  0x14   :  { %p68_p9 = pnand %p67_p8, %p61_p5 }
  0x16   :  { %71 = shalt.err (!%p68_p9)
}
  0x17   :  { %32 = dma.vmem_to_hbm [thread:$0]  %s30_s12, 64, %s103_s1, [#allocation4]  }
  0x18   :  { %82 = dma.done.wait [#allocation4], 64  }
  0x19   :  { %83 = vsyncadd [#allocation4], 4294967232 }
  0x1a   :  { %36 = vsyncpa [#allocation3], 1 }
  0x1b   :  { %37 = vsyncpa [#allocation4], 1 }

</bundles_post_ra>
